<compile_context>
chip_gen: v5e
topology: v5e:2x2
jax: 0.10.0
libtpu: 0.0.40
codegen_flags: <defaults>
</compile_context>

<pallas_src>
import math
import functools

import jax
import jax.numpy as jnp
from jax import lax
from jax.experimental import pallas as pl
from jax.experimental.pallas import tpu as pltpu


# ----------------------------------------------------------------------------
# Kernel
# ----------------------------------------------------------------------------
def _attn_kernel(xq_ref, xk_ref, xv_ref, o_ref,
                 m_sc, l_sc, acc_sc, qs_sc,
                 *, scale2, kv_tile, valid_len, mask_keys):
    """One grid step: HB heads, one query tile (T), one key/value tile (S).

    xq_ref: (HB, ch, T)    xk_ref/xv_ref: (HB, ch, S)    o_ref: (HB, ch, T)
    m_sc/l_sc: (HB, 1, T) f32 running max / running sum (online softmax)
    acc_sc:    (HB, ch, T) f32 running output accumulator
    qs_sc:     (HB, ch, T) pre-scaled q tile (input dtype), written at kv==0
    """
    kv = pl.program_id(2)

    @pl.when(kv == 0)
    def _init():
        m_sc[...] = jnp.full_like(m_sc, -jnp.inf)
        l_sc[...] = jnp.zeros_like(l_sc)
        acc_sc[...] = jnp.zeros_like(acc_sc)
        # Fold both attention scales into q once per query tile:
        #   (q*s) . (k*s) == q . k * s^2,  s^2 = 1/sqrt(ch).
        qs_sc[...] = (xq_ref[...] * scale2).astype(qs_sc.dtype)

    qs = qs_sc[...]                       # (HB, ch, T), input dtype
    k = xk_ref[...]                       # (HB, ch, S)
    v = xv_ref[...]                       # (HB, ch, S)

    # Transposed logits: s_t[h, s, t] = sum_c k[h,c,s] * qs[h,c,t]
    # -> (HB, S, T), f32 accumulation on the MXU.
    s_t = lax.dot_general(
        k, qs,
        dimension_numbers=(((1,), (1,)), ((0,), (0,))),
        preferred_element_type=jnp.float32,
    )

    if mask_keys:
        # Padded key positions get a large negative logit (not -inf: the very
        # first kv tile always contains real keys, so m stays finite).
        s_idx = kv * kv_tile + lax.broadcasted_iota(jnp.int32, (1, kv_tile, 1), 1)
        s_t = jnp.where(s_idx < valid_len, s_t, -1e30)

    # Online softmax over the source (sublane) axis; stats are (HB, 1, T).
    m_prev = m_sc[...]
    m_new = jnp.maximum(m_prev, jnp.max(s_t, axis=1, keepdims=True))
    alpha = jnp.exp(m_prev - m_new)                       # (HB, 1, T)
    p_t = jnp.exp(s_t - m_new)                            # (HB, S, T), f32

    p_cast = p_t.astype(v.dtype)

    # Row-sum on the MXU (ones . p) instead of an XLU cross-sublane reduce.
    ones_row = jnp.ones((p_cast.shape[0], 1, p_cast.shape[1]), dtype=p_cast.dtype)
    row_sum = lax.dot_general(
        ones_row, p_cast,
        dimension_numbers=(((2,), (1,)), ((0,), (0,))),
        preferred_element_type=jnp.float32,
    )                                                     # (HB, 1, T)
    l_sc[...] = alpha * l_sc[...] + row_sum

    # acc[h, c, t] += sum_s v[h,c,s] * p[h,s,t]  -> (HB, ch, T)
    pv = lax.dot_general(
        v, p_cast,
        dimension_numbers=(((2,), (1,)), ((0,), (0,))),
        preferred_element_type=jnp.float32,
    )
    acc_sc[...] = alpha * acc_sc[...] + pv
    m_sc[...] = m_new

    @pl.when(kv == pl.num_programs(2) - 1)
    def _finalize():
        # Exact reciprocal (approx=True caused a ~3e-3 mismatch vs reference).
        o_ref[...] = (acc_sc[...] * (1.0 / l_sc[...])).astype(o_ref.dtype)


# ----------------------------------------------------------------------------
# Per-generation config + tile planner
# ----------------------------------------------------------------------------
def _device_config():
    """Returns (vmem_limit_bytes, multi_core)."""
    kind = ""
    try:
        dev = jax.devices()[0]
        if dev.platform == "tpu":
            kind = dev.device_kind.lower()
    except Exception:
        pass
    if "v7" in kind:
        return 48 * 1024 * 1024, True          # 64 MiB physical per TC
    if "v6" in kind or "v5e" in kind or "v5 lite" in kind:
        return 96 * 1024 * 1024, False         # 128 MiB physical, 1 TC
    if "v4" in kind or "v5p" in kind or "v5" in kind:
        return 96 * 1024 * 1024, True          # 128 MiB physical, megacore
    if kind:
        return 64 * 1024 * 1024, True          # other TPU: middle ground
    return 48 * 1024 * 1024, True              # unknown / interpret: conservative


def _plan_tiles(B, ch, Lp, itemsize, budget, *, max_hb=8, multi_core=True):
    """Pick (hb, tq, tk) under a VMEM budget.

    Preference order: K/V residency (tk == Lp) > large query tile tq
    > both TensorCores busy (even parallel step count) > large head block.
    """
    def usage(hb, tq, tk):
        kv_bufs = 2 * 2 * hb * ch * tk * itemsize              # K and V, double-buffered
        qo_bufs = 2 * 2 * hb * ch * tq * itemsize              # Q in + O out, double-buffered
        scratch = hb * tq * (2 * 4 + ch * 4 + ch * itemsize)   # m, l, acc, scaled-q
        interm = 3 * hb * tk * tq * 4 + 2 * hb * ch * tq * 4   # logits/probs + f32 temps
        return kv_bufs + qo_bufs + scratch + interm

    hb_cands = [d for d in range(min(B, max_hb), 0, -1) if B % d == 0]
    base = (128, 256, 384, 512, 768, 1024, 1536, 2048)
    seq_cands = sorted({t for t in base + (Lp,) if t <= Lp and Lp % t == 0},
                       reverse=True)

    best, best_score = None, None
    for hb in hb_cands:
        for tq in seq_cands:
            for tk in seq_cands:
                if usage(hb, tq, tk) > budget:
                    continue
                par_steps = (B // hb) * (Lp // tq)
                score = 0
                if tk == Lp:                 # K/V resident across the query loop
                    score += 1_000_000_000
                score += tq * 10_000          # K/V HBM re-reads scale with Lp/tq
                if multi_core and par_steps >= 2:
                    score += 2_000_000        # keep both TensorCores busy
                    if par_steps % 2 == 0:
                        score += 5_000        # balanced halves
                score += hb * 100 + tk // 128
                if best_score is None or score > best_score:
                    best, best_score = (hb, tq, tk), score
    if best is None:
        best = (1, 128, 128)                 # minimal fallback, always fits
    return best


# ----------------------------------------------------------------------------
# Wrapper
# ----------------------------------------------------------------------------
def qkv_attention_legacy(qkv: jax.Array, n_heads: int,
                         *, max_heads_per_block: int = 8) -> jax.Array:
    """Pallas implementation of QKVAttentionLegacy.forward.

    qkv: (bs, width, length) with width % (3 * n_heads) == 0.
    returns: (bs, n_heads * ch, length)
    """
    bs, width, length = qkv.shape
    assert width % (3 * n_heads) == 0, (
        f"Width {width} is not divisible by {3 * n_heads}")
    ch = width // (3 * n_heads)
    B = bs * n_heads
    itemsize = jnp.dtype(qkv.dtype).itemsize

    # Free reshape (no copy): (bs, 3*n_heads*ch, L) -> (B, 3*ch, L);
    # per row the channels are [0:ch]=q, [ch:2ch]=k, [2ch:3ch]=v.
    x = qkv.reshape(B, 3 * ch, length)

    # Pad the length axis to a multiple of 128 lanes; padded keys are masked
    # inside the kernel and padded query columns are sliced off below.
    Lp = ((length + 127) // 128) * 128
    padded = Lp != length
    if padded:
        x = jnp.pad(x, ((0, 0), (0, 0), (0, Lp - length)))

    vmem_limit, multi_core = _device_config()
    plan_budget = int(0.70 * vmem_limit)     # headroom for compiler temporaries
    hb, tq, tk = _plan_tiles(B, ch, Lp, itemsize, plan_budget,
                             max_hb=max_heads_per_block, multi_core=multi_core)

    # Zero-copy q/k/v channel-group selection needs the per-head channel
    # offset (ch) on a packed-sublane boundary: 8 rows for 32-bit dtypes,
    # 16 for 16-bit, 32 for 8-bit.
    sublane_align = 8 * max(1, 4 // itemsize)
    if ch % sublane_align == 0:
        q_in = k_in = v_in = x
        q_g, k_g, v_g = 0, 1, 2
    else:
        # ch not sublane-aligned: fall back to materialized slices so the
        # channel block equals the full array dim.
        q_in, k_in, v_in = x[:, :ch], x[:, ch:2 * ch], x[:, 2 * ch:]
        q_g = k_g = v_g = 0

    scale2 = 1.0 / math.sqrt(ch)   # == (ch ** -0.25) ** 2, folded onto q

    grid = (B // hb, Lp // tq, Lp // tk)

    in_specs = [
        pl.BlockSpec((hb, ch, tq), lambda b, qi, ki, g=q_g: (b, g, qi)),
        pl.BlockSpec((hb, ch, tk), lambda b, qi, ki, g=k_g: (b, g, ki)),
        pl.BlockSpec((hb, ch, tk), lambda b, qi, ki, g=v_g: (b, g, ki)),
    ]
    out_spec = pl.BlockSpec((hb, ch, tq), lambda b, qi, ki: (b, 0, qi))

    kernel = functools.partial(
        _attn_kernel, scale2=scale2, kv_tile=tk,
        valid_len=length, mask_keys=padded)

    out = pl.pallas_call(
        kernel,
        out_shape=jax.ShapeDtypeStruct((B, ch, Lp), qkv.dtype),
        grid_spec=pltpu.PrefetchScalarGridSpec(
            num_scalar_prefetch=0,
            grid=grid,
            in_specs=in_specs,
            out_specs=out_spec,
            scratch_shapes=[
                pltpu.VMEM((hb, 1, tq), jnp.float32),    # running max
                pltpu.VMEM((hb, 1, tq), jnp.float32),    # running sum
                pltpu.VMEM((hb, ch, tq), jnp.float32),   # output accumulator
                pltpu.VMEM((hb, ch, tq), qkv.dtype),     # pre-scaled q tile
            ],
        ),
        compiler_params=pltpu.CompilerParams(
            dimension_semantics=("parallel", "parallel", "arbitrary"),
            vmem_limit_bytes=vmem_limit,
        ),
    )(q_in, k_in, v_in)

    out = out.reshape(bs, n_heads * ch, Lp)
    if padded:
        out = out[:, :, :length]
    return out


# ----------------------------------------------------------------------------
# Pure-JAX reference (mirrors the PyTorch forward) + self-test
# ----------------------------------------------------------------------------
def _reference(qkv: jax.Array, n_heads: int) -> jax.Array:
    bs, width, length = qkv.shape
    ch = width // (3 * n_heads)
    x = qkv.reshape(bs * n_heads, 3 * ch, length)
    q, k, v = x[:, :ch], x[:, ch:2 * ch], x[:, 2 * ch:]
    scale = 1.0 / math.sqrt(math.sqrt(ch))
    w = jnp.einsum('bct,bcs->bts', q * scale, k * scale,
                   precision=lax.Precision.HIGHEST)
    w = jax.nn.softmax(w.astype(jnp.float32), axis=-1).astype(qkv.dtype)
    a = jnp.einsum('bts,bcs->bct', w, v, precision=lax.Precision.HIGHEST)
    return a.reshape(bs, -1, length)


if __name__ == "__main__":
    # Small shapes consistent with the module: bs=2, n_heads=2, ch=8, length=16
    bs, n_heads, ch, length = 2, 2, 8, 16
    width = 3 * n_heads * ch  # 48

    key = jax.random.PRNGKey(0)
    qkv = jax.random.normal(key, (bs, width, length), dtype=jnp.float32)

    out = qkv_attention_legacy(qkv, n_heads)
    out = jax.block_until_ready(out)

    ref = _reference(qkv, n_heads)
    assert out.shape == (bs, n_heads * ch, length), out.shape
    max_err = float(jnp.max(jnp.abs(out - ref)))
    # Exact reciprocal + exact masking: ~1e-6 in interpret mode; 2e-3 leaves
    # headroom for MXU f32 pass decomposition on hardware.
    assert max_err < 2e-3, f"mismatch vs reference: max abs err = {max_err}"

    print("KERNEL_OK")
</pallas_src>

<mosaic_0001>
module attributes {stable_mosaic.version = 11 : i64} {
  func.func @_attn_kernel(%arg0: i32, %arg1: i32, %arg2: i32, %arg3: memref<2x8x128xf32, #tpu.memory_space<vmem>>, %arg4: memref<2x8x128xf32, #tpu.memory_space<vmem>>, %arg5: memref<2x8x128xf32, #tpu.memory_space<vmem>>, %arg6: memref<2x8x128xf32, #tpu.memory_space<vmem>>, %arg7: memref<2x1x128xf32, #tpu.memory_space<vmem>>, %arg8: memref<2x1x128xf32, #tpu.memory_space<vmem>>, %arg9: memref<2x8x128xf32, #tpu.memory_space<vmem>>, %arg10: memref<2x8x128xf32, #tpu.memory_space<vmem>>) attributes {dimension_semantics = [#tpu.dimension_semantics<parallel>, #tpu.dimension_semantics<parallel>, #tpu.dimension_semantics<arbitrary>], iteration_bounds = array<i64: 2, 1, 1>, scalar_prefetch = 0 : i64, scratch_operands = 4 : i64, tpu.core_type = #tpu.core_type<tc>, window_params = [{transform_indices = @transform_0, window_bounds = array<i64: 2, 8, 128>}, {transform_indices = @transform_1, window_bounds = array<i64: 2, 8, 128>}, {transform_indices = @transform_2, window_bounds = array<i64: 2, 8, 128>}, {transform_indices = @transform_3, window_bounds = array<i64: 2, 8, 128>}]} {
    %c0_i32 = arith.constant 0 : i32
    %0 = arith.cmpi eq, %arg2, %c0_i32 : i32
    %1 = arith.extui %0 : i1 to i32
    %c0_i32_0 = arith.constant 0 : i32
    %2 = arith.cmpi ne, %1, %c0_i32_0 : i32
    scf.if %2 {
      %cst_34 = arith.constant 0xFF800000 : f32
      %42 = vector.broadcast %cst_34 : f32 to vector<2x1x128xf32>
      %c0_35 = arith.constant 0 : index
      %c0_36 = arith.constant 0 : index
      %c0_37 = arith.constant 0 : index
      %43 = vector.load %arg7[%c0_35, %c0_36, %c0_37] : memref<2x1x128xf32, #tpu.memory_space<vmem>>, vector<2x1x128xf32>
      tpu.vector_store %arg7[%c0_35, %c0_36, %c0_37], %42 {strides = array<i32>} : memref<2x1x128xf32, #tpu.memory_space<vmem>>, vector<2x1x128xf32>,
      %cst_38 = arith.constant 0.000000e+00 : f32
      %44 = vector.broadcast %cst_38 : f32 to vector<2x1x128xf32>
      %c0_39 = arith.constant 0 : index
      %c0_40 = arith.constant 0 : index
      %c0_41 = arith.constant 0 : index
      %45 = vector.load %arg8[%c0_39, %c0_40, %c0_41] : memref<2x1x128xf32, #tpu.memory_space<vmem>>, vector<2x1x128xf32>
      tpu.vector_store %arg8[%c0_39, %c0_40, %c0_41], %44 {strides = array<i32>} : memref<2x1x128xf32, #tpu.memory_space<vmem>>, vector<2x1x128xf32>,
      %cst_42 = arith.constant 0.000000e+00 : f32
      %46 = vector.broadcast %cst_42 : f32 to vector<2x8x128xf32>
      %c0_43 = arith.constant 0 : index
      %c0_44 = arith.constant 0 : index
      %c0_45 = arith.constant 0 : index
      %47 = vector.load %arg9[%c0_43, %c0_44, %c0_45] : memref<2x8x128xf32, #tpu.memory_space<vmem>>, vector<2x8x128xf32>
      tpu.vector_store %arg9[%c0_43, %c0_44, %c0_45], %46 {strides = array<i32>} : memref<2x8x128xf32, #tpu.memory_space<vmem>>, vector<2x8x128xf32>,
      %c0_46 = arith.constant 0 : index
      %c0_47 = arith.constant 0 : index
      %c0_48 = arith.constant 0 : index
      %48 = vector.load %arg3[%c0_46, %c0_47, %c0_48] : memref<2x8x128xf32, #tpu.memory_space<vmem>>, vector<2x8x128xf32>
      %cst_49 = arith.constant 0.353553385 : f32
      %49 = vector.broadcast %cst_49 : f32 to vector<2x8x128xf32>
      %50 = arith.mulf %48, %49 : vector<2x8x128xf32>
      %c0_50 = arith.constant 0 : index
      %c0_51 = arith.constant 0 : index
      %c0_52 = arith.constant 0 : index
      %51 = vector.load %arg10[%c0_50, %c0_51, %c0_52] : memref<2x8x128xf32, #tpu.memory_space<vmem>>, vector<2x8x128xf32>
      tpu.vector_store %arg10[%c0_50, %c0_51, %c0_52], %50 {strides = array<i32>} : memref<2x8x128xf32, #tpu.memory_space<vmem>>, vector<2x8x128xf32>,
    } else {
    }
    %c0 = arith.constant 0 : index
    %c0_1 = arith.constant 0 : index
    %c0_2 = arith.constant 0 : index
    %3 = vector.load %arg10[%c0, %c0_1, %c0_2] : memref<2x8x128xf32, #tpu.memory_space<vmem>>, vector<2x8x128xf32>
    %c0_3 = arith.constant 0 : index
    %c0_4 = arith.constant 0 : index
    %c0_5 = arith.constant 0 : index
    %4 = vector.load %arg4[%c0_3, %c0_4, %c0_5] : memref<2x8x128xf32, #tpu.memory_space<vmem>>, vector<2x8x128xf32>
    %c0_6 = arith.constant 0 : index
    %c0_7 = arith.constant 0 : index
    %c0_8 = arith.constant 0 : index
    %5 = vector.load %arg5[%c0_6, %c0_7, %c0_8] : memref<2x8x128xf32, #tpu.memory_space<vmem>>, vector<2x8x128xf32>
    %cst = arith.constant dense<0.000000e+00> : vector<2x128x128xf32>
    %6 = tpu.matmul %4, %3, %cst {dimension_numbers = #tpu.dot_dimension_numbers<[1], [1], [2], [2], [0, 0, 0, 2, 1, 2], [0], [0]>} : vector<2x8x128xf32>, vector<2x8x128xf32>, vector<2x128x128xf32> -> vector<2x128x128xf32>
    %c128_i32 = arith.constant 128 : i32
    %7 = arith.muli %arg2, %c128_i32 : i32
    %8 = tpu.iota {dimensions = array<i32: 1>} : vector<1x128x1xi32>
    %9 = vector.broadcast %7 : i32 to vector<1x128x1xi32>
    %10 = arith.addi %9, %8 : vector<1x128x1xi32>
    %c16_i32 = arith.constant 16 : i32
    %11 = vector.broadcast %c16_i32 : i32 to vector<1x128x1xi32>
    %12 = arith.cmpi slt, %10, %11 : vector<1x128x1xi32>
    %cst_9 = arith.constant -1.000000e+30 : f32
    %13 = vector.shape_cast %12 : vector<1x128x1xi1> to vector<1x128x1xi1>
    %14 = vector.broadcast %13 : vector<1x128x1xi1> to vector<2x128x128xi1>
    %15 = vector.broadcast %cst_9 : f32 to vector<2x128x128xf32>
    %16 = arith.select %14, %6, %15 : vector<2x128x128xi1>, vector<2x128x128xf32>
    %c0_10 = arith.constant 0 : index
    %c0_11 = arith.constant 0 : index
    %c0_12 = arith.constant 0 : index
    %17 = vector.load %arg7[%c0_10, %c0_11, %c0_12] : memref<2x1x128xf32, #tpu.memory_space<vmem>>, vector<2x1x128xf32>
    %cst_13 = arith.constant dense<0xFF800000> : vector<2x128xf32>
    %18 = vector.multi_reduction <maximumf>, %16, %cst_13 [1] : vector<2x128x128xf32> to vector<2x128xf32>
    %19 = vector.shape_cast %18 : vector<2x128xf32> to vector<2x1x128xf32>
    %20 = arith.maximumf %17, %19 : vector<2x1x128xf32>
    %21 = arith.subf %17, %20 : vector<2x1x128xf32>
    %22 = math.exp %21 : vector<2x1x128xf32>
    %23 = vector.broadcast %20 : vector<2x1x128xf32> to vector<2x128x128xf32>
    %24 = arith.subf %16, %23 : vector<2x128x128xf32>
    %25 = math.exp %24 : vector<2x128x128xf32>
    %cst_14 = arith.constant 1.000000e+00 : f32
    %26 = vector.broadcast %cst_14 : f32 to vector<2x1x128xf32>
    %cst_15 = arith.constant dense<0.000000e+00> : vector<2x1x128xf32>
    %27 = tpu.matmul %26, %25, %cst_15 {dimension_numbers = #tpu.dot_dimension_numbers<[2], [1], [1], [2], [0, 0, 0, 1, 1, 2], [0], [0]>} : vector<2x1x128xf32>, vector<2x128x128xf32>, vector<2x1x128xf32> -> vector<2x1x128xf32>
    %c0_16 = arith.constant 0 : index
    %c0_17 = arith.constant 0 : index
    %c0_18 = arith.constant 0 : index
    %28 = vector.load %arg8[%c0_16, %c0_17, %c0_18] : memref<2x1x128xf32, #tpu.memory_space<vmem>>, vector<2x1x128xf32>
    %29 = arith.mulf %22, %28 : vector<2x1x128xf32>
    %30 = arith.addf %29, %27 : vector<2x1x128xf32>
    %c0_19 = arith.constant 0 : index
    %c0_20 = arith.constant 0 : index
    %c0_21 = arith.constant 0 : index
    %31 = vector.load %arg8[%c0_19, %c0_20, %c0_21] : memref<2x1x128xf32, #tpu.memory_space<vmem>>, vector<2x1x128xf32>
    tpu.vector_store %arg8[%c0_19, %c0_20, %c0_21], %30 {strides = array<i32>} : memref<2x1x128xf32, #tpu.memory_space<vmem>>, vector<2x1x128xf32>,
    %cst_22 = arith.constant dense<0.000000e+00> : vector<2x8x128xf32>
    %32 = tpu.matmul %5, %25, %cst_22 {dimension_numbers = #tpu.dot_dimension_numbers<[2], [1], [1], [2], [0, 0, 0, 1, 1, 2], [0], [0]>} : vector<2x8x128xf32>, vector<2x128x128xf32>, vector<2x8x128xf32> -> vector<2x8x128xf32>
    %c0_23 = arith.constant 0 : index
    %c0_24 = arith.constant 0 : index
    %c0_25 = arith.constant 0 : index
    %33 = vector.load %arg9[%c0_23, %c0_24, %c0_25] : memref<2x8x128xf32, #tpu.memory_space<vmem>>, vector<2x8x128xf32>
    %34 = vector.broadcast %22 : vector<2x1x128xf32> to vector<2x8x128xf32>
    %35 = arith.mulf %34, %33 : vector<2x8x128xf32>
    %36 = arith.addf %35, %32 : vector<2x8x128xf32>
    %c0_26 = arith.constant 0 : index
    %c0_27 = arith.constant 0 : index
    %c0_28 = arith.constant 0 : index
    %37 = vector.load %arg9[%c0_26, %c0_27, %c0_28] : memref<2x8x128xf32, #tpu.memory_space<vmem>>, vector<2x8x128xf32>
    tpu.vector_store %arg9[%c0_26, %c0_27, %c0_28], %36 {strides = array<i32>} : memref<2x8x128xf32, #tpu.memory_space<vmem>>, vector<2x8x128xf32>,
    %c0_29 = arith.constant 0 : index
    %c0_30 = arith.constant 0 : index
    %c0_31 = arith.constant 0 : index
    %38 = vector.load %arg7[%c0_29, %c0_30, %c0_31] : memref<2x1x128xf32, #tpu.memory_space<vmem>>, vector<2x1x128xf32>
    tpu.vector_store %arg7[%c0_29, %c0_30, %c0_31], %20 {strides = array<i32>} : memref<2x1x128xf32, #tpu.memory_space<vmem>>, vector<2x1x128xf32>,
    %c0_i32_32 = arith.constant 0 : i32
    %39 = arith.cmpi eq, %arg2, %c0_i32_32 : i32
    %40 = arith.extui %39 : i1 to i32
    %c0_i32_33 = arith.constant 0 : i32
    %41 = arith.cmpi ne, %40, %c0_i32_33 : i32
    scf.if %41 {
      %c0_34 = arith.constant 0 : index
      %c0_35 = arith.constant 0 : index
      %c0_36 = arith.constant 0 : index
      %42 = vector.load %arg9[%c0_34, %c0_35, %c0_36] : memref<2x8x128xf32, #tpu.memory_space<vmem>>, vector<2x8x128xf32>
      %c0_37 = arith.constant 0 : index
      %c0_38 = arith.constant 0 : index
      %c0_39 = arith.constant 0 : index
      %43 = vector.load %arg8[%c0_37, %c0_38, %c0_39] : memref<2x1x128xf32, #tpu.memory_space<vmem>>, vector<2x1x128xf32>
      %cst_40 = arith.constant 1.000000e+00 : f32
      %44 = vector.broadcast %cst_40 : f32 to vector<2x1x128xf32>
      %45 = arith.divf %44, %43 : vector<2x1x128xf32>
      %46 = vector.broadcast %45 : vector<2x1x128xf32> to vector<2x8x128xf32>
      %47 = arith.mulf %42, %46 : vector<2x8x128xf32>
      %c0_41 = arith.constant 0 : index
      %c0_42 = arith.constant 0 : index
      %c0_43 = arith.constant 0 : index
      %48 = vector.load %arg6[%c0_41, %c0_42, %c0_43] : memref<2x8x128xf32, #tpu.memory_space<vmem>>, vector<2x8x128xf32>
      tpu.vector_store %arg6[%c0_41, %c0_42, %c0_43], %47 {strides = array<i32>} : memref<2x8x128xf32, #tpu.memory_space<vmem>>, vector<2x8x128xf32>,
    } else {
    }
    return
  }
  func.func @transform_0(%arg0: i32, %arg1: i32, %arg2: i32) -> (i32, i32, i32) {
    %c0_i32 = arith.constant 0 : i32
    %c0_i32_0 = arith.constant 0 : i32
    return %arg0, %c0_i32, %arg1 : i32, i32, i32
  }
  func.func @transform_1(%arg0: i32, %arg1: i32, %arg2: i32) -> (i32, i32, i32) {
    %c1_i32 = arith.constant 1 : i32
    %c0_i32 = arith.constant 0 : i32
    return %arg0, %c1_i32, %arg2 : i32, i32, i32
  }
  func.func @transform_2(%arg0: i32, %arg1: i32, %arg2: i32) -> (i32, i32, i32) {
    %c2_i32 = arith.constant 2 : i32
    %c0_i32 = arith.constant 0 : i32
    return %arg0, %c2_i32, %arg2 : i32, i32, i32
  }
  func.func @transform_3(%arg0: i32, %arg1: i32, %arg2: i32) -> (i32, i32, i32) {
    %c0_i32 = arith.constant 0 : i32
    %c0_i32_0 = arith.constant 0 : i32
    return %arg0, %c0_i32, %arg1 : i32, i32, i32
  }
}

</mosaic_0001>

<bundles_post_ra>
// kernel: tpu_custom_call.1
= control target key start
LH: loop header
LB: loop body
LE: loop exit
PB: predicated region body
PF: predicated region fallthrough
CT: control target
= control target key end

     0   :  { %s1801_s0 = inlined_call_operand.hbm [shape: f32[4,24,128], index: 0, kind: input, shape index: {}]   ;;  %s1802_s1 = inlined_call_operand.hbm [shape: f32[4,24,128], index: 1, kind: input, shape index: {}]   ;;  %s1803_s2 = inlined_call_operand.hbm [shape: f32[4,24,128], index: 2, kind: input, shape index: {}]   ;;  %s1804_s3 = inlined_call_operand.hbm [shape: f32[4,8,128], index: 3, kind: output, shape index: {}]  }
   0x1   :  { %1812 = sst [smem:[#allocation23_spill]] %s1802_s1 }
   0x2   :  { %8 = vsyncpa [#allocation7], 0 }
   0x3   :  { %10 = vsyncpa [#allocation7 + $0x1], 0 }
   0x4   :  { %11 = vsyncpa [#allocation10], 0 }
   0x5   :  { %13 = vsyncpa [#allocation10 + $0x1], 0 }
   0x6   :  { %14 = vsyncpa [#allocation8], 0 }
   0x7   :  { %16 = vsyncpa [#allocation8 + $0x1], 0  ;;  %s1562_s12 = smov 0   ;;  %s1564_s13 = smov 0  }
   0x8   :  { %s1566_s14 = smov 0   ;;  %s1568_s15 = smov 0  }
   0x9   :  { %s1570_s16 = smov 0   ;;  %s1572_s17 = smov 0  }
   0xa LB: > { %1813 = sst [smem:[#allocation16_spill]] %s1512_s12  ;;  %s1593_s18 = sadd.s32 4294967295, %s1532_s17   ;;  %s1532_s17 = sphi %s1572_s17, %s22_s17   ;;  %s1528_s16 = sphi %s1570_s16, %s1833_s16   ;;  %s1524_s15 = sphi %s1568_s15, %s1832_s15   ;;  %s1520_s14 = sphi %s1566_s14, %s1831_s14   ;;  %s1516_s13 = sphi %s1564_s13, %s1835_s13   ;;  %s1512_s12 = sphi %s1562_s12, %s1834_s12  }
   0xb   : > { %1814 = sst [smem:[#allocation17_spill]] %s1520_s14  ;;  %s1199_s19 = sadd.s32 4294967294, %s1532_s17  }
   0xc   : > { %1815 = sst [smem:[#allocation18_spill]] %s1528_s16  ;;  %s41_s20 = sadd.s32 1, %s1528_s16 }
   0xd   : > { %1816 = sst [smem:[#allocation19_spill]] %s1532_s17  ;;  %s50_s21 = sadd.s32 1, %s1520_s14 }
   0xe   : > { %p43_p0 = scmp.ge.s32.totalorder %s41_s20, 2  ;;  %p57_p1 = scmp.ne.s32.totalorder %s1520_s14, %s1516_s13 }
   0xf   : > { %p58_p2 = scmp.eq.s32.totalorder %s1532_s17, 0  ;;  %p63_p3 = scmp.ne.s32.totalorder %s1516_s13, %s1512_s12 }
  0x10   : > { %s1837_s20 = smov (%p43_p0, %s41_s20), 0  ;;  %p64_p5 = scmp.eq.s32.totalorder %s1593_s18, 0 }
  0x11   : > { %1817 = sst [smem:[#allocation20_spill]] %s1837_s20  ;;  %p1605_p4 = por %p58_p2, %p57_p1 }
  0x12   : > { %s45_s23 = ssub.s32 %s1528_s16, %s1837_s20  ;;  %p145_p6 = scmp.eq.s32.totalorder %s1593_s18, 1 }
  0x13   : > { %p48_p7 = scmp.eq.s32.totalorder %s45_s23, 0  ;;  %p1613_p8 = por %p64_p5, %p63_p3 }
  0x14   : > { %p1617_p9 = por %p145_p6, %p57_p1  ;;  %p151_p10 = scmp.eq.s32.totalorder %s1199_s19, 1 }
  0x15   : > { %s1622_s26 = scalar_select %p48_p7, %s1520_s14, %s50_s21  }
  0x16   : > { %p1624_p11 = por %p151_p10, %p63_p3  ;;  %p1201_p12 = scmp.ge.s32.totalorder %s1532_s17, 2 }
  0x17   : > { %1821 = sst [smem:[#allocation21_spill]] %s1622_s26  ;;  %p1278_p13 = scmp.lt.s32.totalorder %s1532_s17, 2 }
  0x18   : > { %s1822_s27 = scalar_select %p1624_p11, 1, 0 }
  0x19   : > { %s171_s28 = sand.u32 1, %s1520_s14   ;;  %s1634_s30 = smul.u32 48, %s1528_s16 }
  0x1a   : > { %1823 = sst [smem:[#allocation22_spill]] %s1822_s27  ;;  %s1631_s29 = sshll.u32 %s171_s28, 4 }
  0x1b   : > { %p1638_p0 = pnand %p1278_p13, %p1605_p4  ;;  %s195_s5 = sand.u32 1, %s1532_s17  }
  0x1c   : > { %s1825_s1 = sld [smem:[#allocation23_spill]]  ;;  %s199_s9 = scalar_lea.vmem [#allocation9], %s1631_s29 }
  0x1d   : > { %s210_s10 = sshll.u32 %s199_s9, 4  ;;  %p1210_p1 = scmp.ge.s32.totalorder %s1532_s17, 1  ;;  %s211_s10 = int_to_ptr.vmem [resolvable:$true] %s210_s10 }
  0x1e   : > { %p243_p2 = scmp.lt.s32.totalorder %s1532_s17, 3  ;;  %s196_s21 = scalar_lea.sflag [#allocation10], %s195_s5 }
  0x1f   : > { %s1534_s22 = smov 384   ;;  %s1535_s23 = smov 128  }
  0x20   : > { %s1536_s20 = smov 8   ;;  %p1652_p3 = pnand %p1210_p1, %p243_p2 }
  0x21   : > { %s182_s9 = scalar_lea.hbm %s1801_s0, %s1634_s30  ;;  %s172_s5 = scalar_lea.sflag [#allocation7], %s171_s28 }
  0x22   : > { %s1104_s8 = scalar_lea.hbm %s1825_s1, %s1634_s30  ;;  %s175_s1 = scalar_lea.vmem [#allocation6], %s1631_s29 }
  0x23   : > { %s1105_s11 = scalar_lea.hbm %s1104_s8, 8  ;;  %s185_s16 = sshll.u32 %s175_s1, 4  ;;  %s186_s16 = int_to_ptr.vmem [resolvable:$true] %s185_s16 }
  0x24   : > { %s208_s19 = sshll.u32 %s1105_s11, 4  ;;  %s183_s11 = sshll.u32 %s182_s9, 4  ;;  %s209_s19 = int_to_ptr.hbm [resolvable:$true] %s208_s19  ;;  %s184_s11 = int_to_ptr.hbm [resolvable:$true] %s183_s11 }
  0x25   : > { %1270 = dma.hbm_to_vmem [thread:$0]  (!%p1638_p0), %s209_s19, 256, %s211_s10, %s196_s21, %s1534_s22, %s1535_s23, %s1536_s20  }
  0x26   : > { %1267 = dma.hbm_to_vmem [thread:$0]  (!%p1638_p0), %s184_s11, 256, %s186_s16, %s172_s5, %s1534_s22, %s1535_s23, %s1536_s20  }
  0x27   : > { %s1112_s10 = scalar_lea.hbm %s1803_s2, %s1634_s30  ;;  %s224_s17 = scalar_lea.vmem [#allocation11], %s1631_s29 }
  0x28   : > { %s1113_s19 = scalar_lea.hbm %s1112_s10, 16  ;;  %s235_s27 = sshll.u32 %s224_s17, 4  ;;  %s236_s27 = int_to_ptr.vmem [resolvable:$true] %s235_s27 }
  0x29   : > { %s233_s12 = sshll.u32 %s1113_s19, 4  ;;  %247 = sbr.rel (%p1652_p3) target bundleno = 724 (0x2d4), region = 32  ;;  %s234_s12 = int_to_ptr.hbm [resolvable:$true] %s233_s12 }
  0x2a   : > { %1273 = dma.hbm_to_vmem [thread:$0]  (!%p1638_p0), %s234_s12, 256, %s236_s27, %s196_s21, %s1534_s22, %s1535_s23, %s1536_s20  }
  0x2b   : > { %s1673_s1 = sand.u32 (!%p1652_p3), 1, %s1516_s13  }
  0x2c   : > { %s1676_s16 = sshll.u32 (!%p1652_p3), %s1673_s1, 4  ;;  %s250_s14 = scalar_lea.sflag (!%p1652_p3), [#allocation7], %s1673_s1 }
  0x2d   : > { %s253_s26 = scalar_lea.vmem (!%p1652_p3), [#allocation6], %s1676_s16 }
  0x2e   : > { %1499 = dma.done.wait (%p1613_p8), %s250_s14, 256  }
  0x2f   : > { %1501 = vsyncadd (%p1613_p8), %s250_s14, 4294967040  ;;  %s259_s12 = sand.u32 1, %s1593_s18   ;;  %s263_s20 = scalar_lea.vmem [#allocation9], %s1676_s16 }
  0x30   : > { %s260_s17 = scalar_lea.sflag [#allocation10], %s259_s12 }
  0x31   : > { %1503 = dma.done.wait (%p1613_p8), %s260_s17, 512  }
  0x32   : > { %1505 = vsyncadd (%p1613_p8), %s260_s17, 4294966784  ;;  %v329_v0 = vld [vmem:[%s263_s20] sm:$0xff]  ;;  %v330_v1 = vld [vmem:[%s263_s20 + $0x8] sm:$0xff]  ;;  %vm365_vm0 = vcmask 64512   ;;  %v1537_v20 = vmov -inf   ;;  %v1538_v33 = vmov 0.0  }
  0x33   : > { %333 = vxpose.xlu0.b32.start.end [1/1] (short) %v329_v0, 128  ;;  %v321_v2 = vld [vmem:[%s253_s26] sm:$0xff]  ;;  %v322_v16 = vld [vmem:[%s253_s26 + $0x8] sm:$0xff]  ;;  %315 = vst [vmem:[#allocation2] sm:$0x1] %v1537_v20  ;;  %s273_s18 = scalar_lea.vmem [#allocation11], %s1676_s16  ;;  %s1755_s24 = scalar_lea.vmem [#allocation12], %s1676_s16 }
  0x34   : > { %v323_v3 = vmul.f32 0.35355338, %v321_v2  ;;  %v324_v17 = vmul.f32 0.35355338, %v322_v16  ;;  %316 = vst [vmem:[#allocation2 + $0x1] sm:$0x1] %v1537_v20 }
  0x35   : > { %317 = vst [vmem:[#allocation3] sm:$0x1] %v1538_v33  ;;  %s1252_s27 = sshll.u32 %s1524_s15, 4  ;;  %s1058_s4 = sshll.u32 %s1755_s24, 4  ;;  %s1059_s4 = int_to_ptr.vmem [resolvable:$true] %s1058_s4 }
  0x36   : > { %429 = vmatpush.msra.mxu0 %v323_v3  ;;  %1253 = vmatpush.msra.mxu2 %v323_v3  ;;  %318 = vst [vmem:[#allocation3 + $0x1] sm:$0x1] %v1538_v33  ;;  %s1057_s30 = scalar_lea.hbm %s1804_s3, %s1252_s27  ;;  %s1045_s15 = scalar_lea.sflag [#allocation8], %s1673_s1 }
  0x37   : > { %574 = vmatpush.msra.mxu1 %v324_v17  ;;  %1254 = vmatpush.msra.mxu3 %v324_v17  ;;  %v331_v17 = vld [vmem:[%s273_s18] sm:$0xff]  ;;  %s1060_s21 = sshll.u32 %s1057_s30, 4  ;;  %s1466_s8 = scalar_lea.hbm %s1804_s3, 32  ;;  %s1061_s21 = int_to_ptr.hbm [resolvable:$true] %s1060_s21 }
  0x38   : > { %s1460_s22 = sshra.s32 %s1061_s21, 4  ;;  %s1461_s22 = int_to_ptr.hbm [resolvable:$true] %s1460_s22 }
  0x39   : > { %s1462_s23 = scalar_lea.hbm %s1461_s22, 16  ;;  %p1467_p7 = scmp.lt.s32.totalorder %s1461_s22, %s1804_s3 }
  0x3a   : > { %v1712_v51 = vld [vmem:[#allocation2] sm:$0x1]  ;;  %p1463_p4 = scmp.ne.s32.totalorder %s1461_s22, %s1462_s23  ;;  %p1468_p8 = scmp.lt.s32.totalorder %s1466_s8, %s1462_s23 }
  0x3c   : > { %p1464_p5 = pnand %p1463_p4, %p1617_p9  ;;  %p1469_p10 = por %p1468_p8, %p1467_p7 }
  0x3e   : > { %p1465_p6 = pneg %p1464_p5 }
  0x40   : > { %p1470_p13 = pnand %p1469_p10, %p1465_p6 }
  0xb3   : > { %479 = vxpose.xlu0.b32.start.end [1/1] (short) %v330_v1, 128 }
  0xd7   : > { %v349_v4 = vpop.trf.xlu0 }
  0xd8   : > { %1215 = vmatmul.msk.f32.vlgmr.msra.gmra.mxu0 %vm365_vm0, %v349_v4 }
  0xdf   : > { %v350_v5 = vpop.trf.xlu0 }
  0xe0   : > { %1216 = vmatmul.msk.f32.gmra.mxu0 %vm365_vm0, %v350_v5 }
  0xe7   : > { %v351_v6 = vpop.trf.xlu0 }
  0xe8   : > { %1217 = vmatmul.msk.f32.gmra.mxu0 %vm365_vm0, %v351_v6 }
  0xef   : > { %v352_v7 = vpop.trf.xlu0 }
  0xf0   : > { %1218 = vmatmul.msk.f32.gmra.mxu0 %vm365_vm0, %v352_v7 }
  0xf7   : > { %v353_v8 = vpop.trf.xlu0 }
  0xf8   : > { %1219 = vmatmul.msk.f32.gmra.mxu0 %vm365_vm0, %v353_v8 }
  0xff   : > { %v354_v9 = vpop.trf.xlu0 }
 0x100   : > { %1220 = vmatmul.msk.f32.gmra.mxu0 %vm365_vm0, %v354_v9 }
 0x107   : > { %v355_v10 = vpop.trf.xlu0 }
 0x108   : > { %1221 = vmatmul.msk.f32.gmra.mxu0 %vm365_vm0, %v355_v10  ;;  %v1539_v10 = vmov 1.0  }
 0x10f   : > { %v356_v11 = vpop.trf.xlu0 }
 0x110   : > { %1222 = vmatmul.msk.f32.gmra.mxu0 %vm365_vm0, %v356_v11 }
 0x117   : > { %v357_v12 = vpop.trf.xlu0 }
 0x118   : > { %1223 = vmatmul.msk.f32.gmra.mxu0 %vm365_vm0, %v357_v12 }
 0x11f   : > { %v358_v13 = vpop.trf.xlu0 }
 0x120   : > { %1224 = vmatmul.msk.f32.gmra.mxu0 %vm365_vm0, %v358_v13 }
 0x127   : > { %v359_v14 = vpop.trf.xlu0 }
 0x128   : > { %1225 = vmatmul.msk.f32.gmra.mxu0 %vm365_vm0, %v359_v14 }
 0x12f   : > { %v360_v15 = vpop.trf.xlu0 }
 0x130   : > { %1226 = vmatmul.msk.f32.gmra.mxu0 %vm365_vm0, %v360_v15 }
 0x137   : > { %v361_v18 = vpop.trf.xlu0 }
 0x138   : > { %1227 = vmatmul.msk.f32.vlgmr.msra.gmra.mxu2 %vm365_vm0, %v361_v18 }
 0x13f   : > { %v362_v19 = vpop.trf.xlu0 }
 0x140   : > { %1228 = vmatmul.msk.f32.gmra.mxu2 %vm365_vm0, %v362_v19 }
 0x147   : > { %v363_v21 = vpop.trf.xlu0 }
 0x148   : > { %1229 = vmatmul.msk.f32.gmra.mxu2 %vm365_vm0, %v363_v21 }
 0x14f   : > { %v364_v22 = vpop.trf.xlu0 }
 0x150   : > { %1230 = vmatmul.msk.f32.gmra.mxu2 %vm365_vm0, %v364_v22 }
 0x155   : > { %v431_v23 = vpop.f32.mrf.mxu0 }
 0x156   : > { %v741_v24 = vmax.f32 %v431_v23, -1e+30 }
 0x157   : > { %v495_v25 = vpop.trf.xlu0 }
 0x158   : > { %v743_v26 = vmax.f32 %v741_v24, -1e+30  ;;  %1231 = vmatmul.msk.f32.vlgmr.msra.gmra.mxu1 %vm365_vm0, %v495_v25 }
 0x15a   : > { %v745_v27 = vmax.f32 %v743_v26, -1e+30 }
 0x15c   : > { %v747_v29 = vmax.f32 %v745_v27, -1e+30 }
 0x15d   : > { %v434_v28 = vpop.f32.mrf.mxu0 }
 0x15e   : > { %v742_v30 = vmax.f32 %v434_v28, -1e+30  ;;  %v749_v34 = vmax.f32 %v747_v29, -1e+30 }
 0x15f   : > { %v496_v31 = vpop.trf.xlu0 }
 0x160   : > { %v744_v32 = vmax.f32 %v742_v30, -1e+30  ;;  %1232 = vmatmul.msk.f32.gmra.mxu1 %vm365_vm0, %v496_v31  ;;  %v751_v38 = vmax.f32 %v749_v34, -1e+30 }
 0x162   : > { %v746_v35 = vmax.f32 %v744_v32, -1e+30  ;;  %v753_v41 = vmax.f32 %v751_v38, -1e+30 }
 0x164   : > { %v748_v36 = vmax.f32 %v746_v35, -1e+30 }
 0x165   : > { %v437_v37 = vpop.f32.mrf.mxu0 }
 0x166   : > { %v750_v39 = vmax.f32 %v748_v36, -1e+30 }
 0x167   : > { %v497_v0 = vpop.trf.xlu0 }
 0x168   : > { %v752_v40 = vmax.f32 %v750_v39, -1e+30  ;;  %1233 = vmatmul.msk.f32.gmra.mxu1 %vm365_vm0, %v497_v0 }
 0x16a   : > { %v754_v42 = vmax.f32 %v752_v40, -1e+30 }
 0x16c   : > { %v755_v43 = vmax.f32 %v753_v41, %v754_v42 }
 0x16d   : > { %v440_v44 = vpop.f32.mrf.mxu0 }
 0x16e   : > { %v756_v45 = vrot.slane %v755_v43, 4 }
 0x16f   : > { %v498_v5 = vpop.trf.xlu0 }
 0x170   : > { %v757_v46 = vmax.f32 %v755_v43, %v756_v45  ;;  %1234 = vmatmul.msk.f32.gmra.mxu1 %vm365_vm0, %v498_v5 }
 0x172   : > { %v758_v47 = vrot.slane %v757_v46, 2 }
 0x174   : > { %v759_v48 = vmax.f32 %v757_v46, %v758_v47 }
 0x175   : > { %v443_v49 = vpop.f32.mrf.mxu0 }
 0x176   : > { %v760_v50 = vrot.slane %v759_v48, 1 }
 0x177   : > { %v499_v9 = vpop.trf.xlu0 }
 0x178   : > { %v761_v52 = vmax.f32 %v759_v48, %v760_v50  ;;  %1235 = vmatmul.msk.f32.gmra.mxu1 %vm365_vm0, %v499_v9  ;;  %v1737_v48 = vld [vmem:[#allocation2 + $0x1] sm:$0x1] }
 0x17a   : > { %v1715_v53 = vmax.f32 %v1712_v51, %v761_v52 }
 0x17c   : > { %v793_v54 = vperm.slane %v1715_v53, 0  ;;  %995 = vst [vmem:[#allocation2] sm:$0x1] %v1715_v53  ;;  %v785_v55 = vsub.f32 %v1712_v51, %v1715_v53 }
 0x17d   : > { %v446_v56 = vpop.f32.mrf.mxu0 }
 0x17e   : > { %v799_v57 = vsub.f32 -1e+30, %v793_v54  ;;  %v798_v63 = vsub.f32 %v434_v28, %v793_v54  ;;  %v797_v1 = vsub.f32 %v431_v23, %v793_v54 }
 0x17f   : > { %v500_v12 = vpop.trf.xlu0 }
 0x180   : > { %v833_v58 = vmul.f32 1.442695, %v799_v57  ;;  %v831_v2 = vmul.f32 1.442695, %v798_v63  ;;  %v829_v4 = vmul.f32 1.442695, %v797_v1  ;;  %1236 = vmatmul.msk.f32.gmra.mxu1 %vm365_vm0, %v500_v12 }
 0x182   : > { %1336 = vpow2.f32 %v833_v58 }
 0x183   : > { %1338 = vpow2.f32 %v831_v2  ;;  %v787_v2 = vmul.f32 1.442695, %v785_v55 }
 0x184   : > { %1340 = vpow2.f32 %v829_v4 }
 0x185   : > { %v449_v59 = vpop.f32.mrf.mxu0 }
 0x187   : > { %v501_v13 = vpop.trf.xlu0 }
 0x188   : > { %v1337_v60 = vpop.eup %1336  ;;  %1237 = vmatmul.msk.f32.gmra.mxu1 %vm365_vm0, %v501_v13 }
 0x189   : > { %893 = vmatpush.msrb.mxu2 %v1337_v60  ;;  %v1339_v6 = vpop.eup %1338 }
 0x18a   : > { %v1341_v8 = vpop.eup %1340 }
 0x18b   : > { %894 = vmatpush.msrb.mxu2 %v1337_v60 }
 0x18d   : > { %v452_v61 = vpop.f32.mrf.mxu0  ;;  %895 = vmatpush.msrb.mxu2 %v1337_v60 }
 0x18f   : > { %896 = vmatpush.msrb.mxu2 %v1337_v60  ;;  %v502_v15 = vpop.trf.xlu0 }
 0x190   : > { %1238 = vmatmul.msk.f32.gmra.mxu1 %vm365_vm0, %v502_v15 }
 0x191   : > { %897 = vmatpush.msrb.mxu2 %v1337_v60 }
 0x193   : > { %898 = vmatpush.msrb.mxu2 %v1337_v60 }
 0x195   : > { %v455_v62 = vpop.f32.mrf.mxu0  ;;  %899 = vmatpush.msrb.mxu2 %v1337_v60 }
 0x197   : > { %900 = vmatpush.msrb.mxu2 %v1337_v60  ;;  %v503_v18 = vpop.trf.xlu0 }
 0x198   : > { %1239 = vmatmul.msk.f32.gmra.mxu1 %vm365_vm0, %v503_v18 }
 0x199   : > { %901 = vmatpush.msrb.mxu2 %v1337_v60 }
 0x19b   : > { %902 = vmatpush.msrb.mxu2 %v1337_v60 }
 0x19d   : > { %v458_v3 = vpop.f32.mrf.mxu0  ;;  %903 = vmatpush.msrb.mxu2 %v1337_v60 }
 0x19f   : > { %904 = vmatpush.msrb.mxu2 %v1337_v60  ;;  %v504_v20 = vpop.trf.xlu0 }
 0x1a0   : > { %1240 = vmatmul.msk.f32.gmra.mxu1 %vm365_vm0, %v504_v20  ;;  %v332_v20 = vld [vmem:[%s273_s18 + $0x8] sm:$0xff] }
 0x1a1   : > { %905 = vmatpush.msrb.mxu2 %v1337_v60 }
 0x1a3   : > { %906 = vmatpush.msrb.mxu2 %v1337_v60 }
 0x1a5   : > { %v461_v7 = vpop.f32.mrf.mxu0  ;;  %907 = vmatpush.msrb.mxu2 %v1339_v6 }
 0x1a7   : > { %908 = vmatpush.msrb.mxu2 %v1341_v8  ;;  %v505_v25 = vpop.trf.xlu0 }
 0x1a8   : > { %909 = vmatmul.f32.vlgmr.msrb.gmra.mxu2 %v1539_v10  ;;  %1241 = vmatmul.msk.f32.gmra.mxu1 %vm365_vm0, %v505_v25 }
 0x1a9   : > { %941 = vmatpush.msra.mxu2 %v1337_v60 }
 0x1ab   : > { %942 = vmatpush.msra.mxu2 %v1337_v60 }
 0x1ad   : > { %v464_v11 = vpop.f32.mrf.mxu0  ;;  %943 = vmatpush.msra.mxu2 %v1337_v60 }
 0x1af   : > { %944 = vmatpush.msra.mxu2 %v1337_v60  ;;  %v506_v31 = vpop.trf.xlu0 }
 0x1b0   : > { %1242 = vmatmul.msk.f32.vlgmr.msra.gmra.mxu3 %vm365_vm0, %v506_v31 }
 0x1b1   : > { %945 = vmatpush.msra.mxu2 %v1337_v60 }
 0x1b3   : > { %946 = vmatpush.msra.mxu2 %v1337_v60 }
 0x1b5   : > { %947 = vmatpush.msra.mxu2 %v1337_v60 }
 0x1b7   : > { %948 = vmatpush.msra.mxu2 %v1337_v60  ;;  %v507_v38 = vpop.trf.xlu0 }
 0x1b8   : > { %1243 = vmatmul.msk.f32.gmra.mxu3 %vm365_vm0, %v507_v38 }
 0x1b9   : > { %949 = vmatpush.msra.mxu2 %v1337_v60 }
 0x1bb   : > { %v467_v14 = vpop.f32.mrf.mxu2  ;;  %950 = vmatpush.msra.mxu2 %v1337_v60 }
 0x1bd   : > { %951 = vmatpush.msra.mxu2 %v1337_v60 }
 0x1bf   : > { %952 = vmatpush.msra.mxu2 %v1337_v60  ;;  %v508_v44 = vpop.trf.xlu0 }
 0x1c0   : > { %1244 = vmatmul.msk.f32.gmra.mxu3 %vm365_vm0, %v508_v44 }
 0x1c1   : > { %953 = vmatpush.msra.mxu2 %v1337_v60 }
 0x1c3   : > { %v470_v16 = vpop.f32.mrf.mxu2  ;;  %954 = vmatpush.msra.mxu2 %v1337_v60 }
 0x1c5   : > { %955 = vmatpush.msra.mxu2 %v1339_v6 }
 0x1c7   : > { %956 = vmatpush.msra.mxu2 %v1341_v8  ;;  %v509_v50 = vpop.trf.xlu0  ;;  %v933_v8 = vld [vmem:[#allocation3] sm:$0x1] }
 0x1c8   : > { %957 = vmatmul.f32.vlgmr.msra.gmra.mxu2 %v331_v17  ;;  %1245 = vmatmul.msk.f32.gmra.mxu3 %vm365_vm0, %v509_v50 }
 0x1cb   : > { %v473_v19 = vpop.f32.mrf.mxu2 }
 0x1cf   : > { %v510_v59 = vpop.trf.xlu0 }
 0x1d0   : > { %1246 = vmatmul.msk.f32.gmra.mxu3 %vm365_vm0, %v510_v59 }
 0x1d3   : > { %v476_v21 = vpop.f32.mrf.mxu2 }
 0x1d5   : > { %v576_v22 = vpop.f32.mrf.mxu1 }
 0x1d6   : > { %v762_v23 = vmax.f32 %v576_v22, -1e+30 }
 0x1d8   : > { %v764_v24 = vmax.f32 %v762_v23, -1e+30 }
 0x1da   : > { %v766_v26 = vmax.f32 %v764_v24, -1e+30 }
 0x1dc   : > { %v768_v28 = vmax.f32 %v766_v26, -1e+30 }
 0x1dd   : > { %v579_v27 = vpop.f32.mrf.mxu1 }
 0x1de   : > { %v763_v29 = vmax.f32 %v579_v27, -1e+30  ;;  %v770_v32 = vmax.f32 %v768_v28, -1e+30 }
 0x1e0   : > { %v765_v30 = vmax.f32 %v763_v29, -1e+30  ;;  %v772_v35 = vmax.f32 %v770_v32, -1e+30 }
 0x1e2   : > { %v767_v33 = vmax.f32 %v765_v30, -1e+30  ;;  %v774_v39 = vmax.f32 %v772_v35, -1e+30 }
 0x1e4   : > { %v769_v34 = vmax.f32 %v767_v33, -1e+30 }
 0x1e5   : > { %v582_v61 = vpop.f32.mrf.mxu1 }
 0x1e6   : > { %v771_v36 = vmax.f32 %v769_v34, -1e+30 }
 0x1e8   : > { %v773_v37 = vmax.f32 %v771_v36, -1e+30 }
 0x1ea   : > { %v775_v40 = vmax.f32 %v773_v37, -1e+30 }
 0x1ec   : > { %v776_v41 = vmax.f32 %v774_v39, %v775_v40  ;;  %v934_v40 = vld [vmem:[#allocation3 + $0x1] sm:$0x1] }
 0x1ed   : > { %v585_v3 = vpop.f32.mrf.mxu1 }
 0x1ee   : > { %v777_v42 = vrot.slane %v776_v41, 4 }
 0x1f0   : > { %v778_v43 = vmax.f32 %v776_v41, %v777_v42 }
 0x1f2   : > { %v779_v45 = vrot.slane %v778_v43, 2 }
 0x1f4   : > { %v780_v46 = vmax.f32 %v778_v43, %v779_v45 }
 0x1f5   : > { %v588_v5 = vpop.f32.mrf.mxu1 }
 0x1f6   : > { %v781_v47 = vrot.slane %v780_v46, 1 }
 0x1f8   : > { %v782_v49 = vmax.f32 %v780_v46, %v781_v47 }
 0x1fa   : > { %v1740_v52 = vmax.f32 %v1737_v48, %v782_v49 }
 0x1fc   : > { %v794_v54 = vperm.slane %v1740_v52, 0  ;;  %996 = vst [vmem:[#allocation2 + $0x1] sm:$0x1] %v1740_v52  ;;  %v786_v56 = vsub.f32 %v1737_v48, %v1740_v52 }
 0x1fd   : > { %v591_v55 = vpop.f32.mrf.mxu1 }
 0x1fe   : > { %v815_v57 = vsub.f32 -1e+30, %v794_v54  ;;  %v814_v62 = vsub.f32 %v579_v27, %v794_v54  ;;  %v813_v63 = vsub.f32 %v576_v22, %v794_v54  ;;  %v789_v38 = vmul.f32 1.442695, %v786_v56 }
 0x200   : > { %v865_v58 = vmul.f32 1.442695, %v815_v57  ;;  %v863_v0 = vmul.f32 1.442695, %v814_v62  ;;  %v861_v1 = vmul.f32 1.442695, %v813_v63 }
 0x202   : > { %1342 = vpow2.f32 %v865_v58 }
 0x203   : > { %1344 = vpow2.f32 %v863_v0 }
 0x204   : > { %1346 = vpow2.f32 %v861_v1 }
 0x205   : > { %1348 = vpow2.f32 %v787_v2  ;;  %v594_v12 = vpop.f32.mrf.mxu1 }
 0x208   : > { %v1343_v60 = vpop.eup %1342 }
 0x209   : > { %913 = vmatpush.msrb.mxu3 %v1343_v60  ;;  %v1345_v4 = vpop.eup %1344 }
 0x20a   : > { %v1347_v6 = vpop.eup %1346 }
 0x20b   : > { %914 = vmatpush.msrb.mxu3 %v1343_v60  ;;  %v1349_v7 = vpop.eup %1348 }
 0x20c   : > { %v935_v9 = vmul.f32 %v1349_v7, %v933_v8  ;;  %v985_v21 = vperm.slane %v1349_v7, 0 }
 0x20d   : > { %915 = vmatpush.msrb.mxu3 %v1343_v60  ;;  %v597_v14 = vpop.f32.mrf.mxu1 }
 0x20e   : > { %v989_v26 = vmul.f32 0.0, %v985_v21 }
 0x20f   : > { %916 = vmatpush.msrb.mxu3 %v1343_v60 }
 0x211   : > { %917 = vmatpush.msrb.mxu3 %v1343_v60 }
 0x213   : > { %918 = vmatpush.msrb.mxu3 %v1343_v60 }
 0x215   : > { %919 = vmatpush.msrb.mxu3 %v1343_v60  ;;  %v600_v23 = vpop.f32.mrf.mxu1 }
 0x217   : > { %920 = vmatpush.msrb.mxu3 %v1343_v60 }
 0x219   : > { %921 = vmatpush.msrb.mxu3 %v1343_v60 }
 0x21b   : > { %922 = vmatpush.msrb.mxu3 %v1343_v60 }
 0x21d   : > { %923 = vmatpush.msrb.mxu3 %v1343_v60  ;;  %v603_v31 = vpop.f32.mrf.mxu1 }
 0x21f   : > { %924 = vmatpush.msrb.mxu3 %v1343_v60 }
 0x221   : > { %925 = vmatpush.msrb.mxu3 %v1343_v60 }
 0x223   : > { %926 = vmatpush.msrb.mxu3 %v1343_v60 }
 0x225   : > { %927 = vmatpush.msrb.mxu3 %v1345_v4  ;;  %v606_v32 = vpop.f32.mrf.mxu1 }
 0x227   : > { %928 = vmatpush.msrb.mxu3 %v1347_v6 }
 0x228   : > { %929 = vmatmul.f32.vlgmr.msrb.gmra.mxu3 %v1539_v10 }
 0x229   : > { %961 = vmatpush.msra.mxu3 %v1343_v60 }
 0x22b   : > { %962 = vmatpush.msra.mxu3 %v1343_v60  ;;  %v910_v51 = vpop.f32.mrf.mxu2 }
 0x22c   : > { %v937_v53 = vadd.f32 %v935_v9, %v910_v51 }
 0x22d   : > { %963 = vmatpush.msra.mxu3 %v1343_v60 }
 0x22e   : > { %939 = vst [vmem:[#allocation3] sm:$0x1] %v937_v53 }
 0x22f   : > { %964 = vmatpush.msra.mxu3 %v1343_v60 }
 0x231   : > { %965 = vmatpush.msra.mxu3 %v1343_v60 }
 0x233   : > { %966 = vmatpush.msra.mxu3 %v1343_v60  ;;  %v609_v33 = vpop.f32.mrf.mxu3 }
 0x235   : > { %967 = vmatpush.msra.mxu3 %v1343_v60  ;;  %v1002_v11 = vld [vmem:[#allocation3] sm:$0x1] }
 0x236   : > { %1350 = vrcp.f32 %v1002_v11  ;;  %v1015_v18 = vand.u32 2147483648, %v1002_v11  ;;  %vm1009_vm2 = vweird.f32 %v1002_v11  ;;  %v1013_v19 = vand.u32 2147483647, %v1002_v11 }
 0x237   : > { %968 = vmatpush.msra.mxu3 %v1343_v60  ;;  %1352 = vpow2.f32 %v789_v38 }
 0x238   : > { %v1016_v24 = vor.u32 1.1754944e-38, %v1015_v18  ;;  %vm1014_vm4 = vcmp.eq.f32.partialorder %v1013_v19, 8.507059e+37 }
 0x239   : > { %969 = vmatpush.msra.mxu3 %v1343_v60 }
 0x23b   : > { %970 = vmatpush.msra.mxu3 %v1343_v60  ;;  %v612_v34 = vpop.f32.mrf.mxu3 }
 0x23c   : > { %v1351_v10 = vpop.eup %1350 }
 0x23d   : > { %971 = vmatpush.msra.mxu3 %v1343_v60  ;;  %v1005_v13 = vmul.f32 %v1351_v10, %v1002_v11  ;;  %vm1010_vm1 = vweird.f32 %v1351_v10  ;;  %v1353_v39 = vpop.eup %1352 }
 0x23e   : > { %vm1011_vm3 = vmor %vm1009_vm2, %vm1010_vm1  ;;  %v936_v41 = vmul.f32 %v1353_v39, %v934_v40  ;;  %v986_v52 = vperm.slane %v1353_v39, 0 }
 0x23f   : > { %972 = vmatpush.msra.mxu3 %v1343_v60  ;;  %v1006_v15 = vsub.f32 1.0, %v1005_v13 }
 0x240   : > { %v990_v59 = vmul.f32 0.0, %v986_v52 }
 0x241   : > { %973 = vmatpush.msra.mxu3 %v1343_v60  ;;  %v1007_v16 = vmul.f32 %v1351_v10, %v1006_v15 }
 0x243   : > { %974 = vmatpush.msra.mxu3 %v1343_v60  ;;  %v1008_v17 = vadd.f32 %v1351_v10, %v1007_v16  ;;  %v615_v35 = vpop.f32.mrf.mxu3 }
 0x245   : > { %975 = vmatpush.msra.mxu3 %v1345_v4  ;;  %v1012_v22 = vsel %vm1011_vm3, %v1351_v10, %v1008_v17 }
 0x246   : > { %v1017_v25 = vsel %vm1014_vm4, %v1016_v24, %v1012_v22 }
 0x247   : > { %976 = vmatpush.msra.mxu3 %v1347_v6  ;;  %v1036_v29 = vperm.slane %v1017_v25, 0 }
 0x248   : > { %977 = vmatmul.f32.vlgmr.msra.gmra.mxu3 %v332_v20 }
 0x24b   : > { %v958_v27 = vpop.f32.mrf.mxu2  ;;  %v618_v36 = vpop.f32.mrf.mxu3 }
 0x24c   : > { %v991_v28 = vadd.f32 %v989_v26, %v958_v27 }
 0x24e   : > { %v1040_v30 = vmul.f32 %v1036_v29, %v991_v28 }
 0x250   : > { %1042 = vst [vmem:[%s1755_s24] sm:$0xff] %v1040_v30 }
 0x253   : > { %v621_v37 = vpop.f32.mrf.mxu3 }
 0x2ab   : > { %v930_v42 = vpop.f32.mrf.mxu3 }
 0x2ac   : > { %v938_v43 = vadd.f32 %v936_v41, %v930_v42 }
 0x2ae   : > { %940 = vst [vmem:[#allocation3 + $0x1] sm:$0x1] %v938_v43 }
 0x2b5   : > { %v1003_v44 = vld [vmem:[#allocation3 + $0x1] sm:$0x1] }
 0x2b6   : > { %1354 = vrcp.f32 %v1003_v44  ;;  %v1030_v54 = vand.u32 2147483648, %v1003_v44  ;;  %vm1024_vm6 = vweird.f32 %v1003_v44  ;;  %v1028_v48 = vand.u32 2147483647, %v1003_v44 }
 0x2b8   : > { %v1031_v57 = vor.u32 1.1754944e-38, %v1030_v54  ;;  %vm1029_vm8 = vcmp.eq.f32.partialorder %v1028_v48, 8.507059e+37 }
 0x2bc   : > { %v1355_v45 = vpop.eup %1354 }
 0x2bd   : > { %v1020_v46 = vmul.f32 %v1355_v45, %v1003_v44  ;;  %vm1025_vm5 = vweird.f32 %v1355_v45 }
 0x2be   : > { %vm1026_vm7 = vmor %vm1024_vm6, %vm1025_vm5 }
 0x2bf   : > { %v1021_v47 = vsub.f32 1.0, %v1020_v46 }
 0x2c1   : > { %v1022_v49 = vmul.f32 %v1355_v45, %v1021_v47 }
 0x2c3   : > { %v1023_v50 = vadd.f32 %v1355_v45, %v1022_v49 }
 0x2c5   : > { %v1027_v56 = vsel %vm1026_vm7, %v1355_v45, %v1023_v50 }
 0x2c6   : > { %v1032_v58 = vsel %vm1029_vm8, %v1031_v57, %v1027_v56 }
 0x2c7   : > { %v1037_v62 = vperm.slane %v1032_v58, 0 }
 0x2cb   : > { %v978_v60 = vpop.f32.mrf.mxu3 }
 0x2cc   : > { %v992_v61 = vadd.f32 %v990_v59, %v978_v60 }
 0x2ce   : > { %v1041_v63 = vmul.f32 %v1037_v62, %v992_v61 }
 0x2d0   : > { %1043 = vst [vmem:[%s1755_s24 + $0x8] sm:$0xff] %v1041_v63 }
 0x2d1   : > { %1473 = shalt.err (!%p1470_p13)
}
 0x2d2   : > { %s1540_s5 = smov 128   ;;  %s1541_s10 = smov 8  }
 0x2d3   : > { %1262 = dma.vmem_to_hbm [thread:$0]  (%p1617_p9), %s1059_s4, 256, %s1061_s21, %s1045_s15, %s1540_s5, %s1540_s5, %s1541_s10  }
 0x2d4 PF: > { %s1827_s19 = sld [smem:[#allocation16_spill]]  ;;  %p1275_p0 = pnand %p1201_p12, %p1624_p11 }
 0x2d5   : > { %s1829_s16 = sld [smem:[#allocation19_spill]] }
 0x2d6   : > { %p1276_p1 = pneg %p1275_p0 }
 0x2da   : > { %s1075_s14 = sand.u32 1, %s1827_s19  }
 0x2db   : > { %s1076_s26 = scalar_lea.sflag [#allocation8], %s1075_s14 }
 0x2dc   : > { %1507 = dma.done.wait (%p1276_p1), %s1076_s26, 256  }
 0x2dd   : > { %1509 = vsyncadd (%p1276_p1), %s1076_s26, 4294967040  ;;  %s22_s17 = sadd.s32 1, %s1829_s16   ;;  %s1830_s20 = sld [smem:[#allocation17_spill]] }
 0x2de   : > { %p19_p2 = scmp.ge.s32.totalorder %s22_s17, 4   ;;  %s1831_s14 = sld [smem:[#allocation21_spill]] }
 0x2df   : > { %s1832_s15 = sld [smem:[#allocation18_spill]]  ;;  %s1834_s12 = smov %s1516_s13 }
 0x2e0   : > { %s1833_s16 = sld [smem:[#allocation20_spill]]  ;;  %21 = sbr.rel (!%p19_p2) target bundleno = 10 (0xa), region = 109 }
 0x2e3   : > { %s1835_s13 = smov %s1830_s20 }
 0x2e5   :  { %1082 = vsyncpa [#allocation7], 1 }
 0x2e6   :  { %1084 = vsyncpa [#allocation7 + $0x1], 1 }
 0x2e7   :  { %1085 = vsyncpa [#allocation10], 1 }
 0x2e8   :  { %1087 = vsyncpa [#allocation10 + $0x1], 1 }
 0x2e9   :  { %1088 = vsyncpa [#allocation8], 1 }
 0x2ea   :  { %1090 = vsyncpa [#allocation8 + $0x1], 1 }

</bundles_post_ra>
